<compile_context>
chip_gen: v5e
topology: v5e:2x2
jax: 0.10.0
libtpu: 0.0.40
codegen_flags: <defaults>
</compile_context>

<pallas_src>
import numpy as np
import jax
import jax.numpy as jnp
from jax.experimental import pallas as pl
from jax.experimental.pallas import tpu as pltpu


# ----------------------------------------------------------------------------
# Parameter / matrix construction (host-side glue; mirrors
# TemporalLayer.create_matrix_M and get_neighbor_nodes exactly).
# ----------------------------------------------------------------------------
def _get_neighbor_nodes(node, n_space, n_lattice):
    if node < 0 or node >= n_space:
        raise ValueError("Node index out of bounds")
    if (node + 1) % n_lattice > 0:
        neighbor_right = node + 1
    else:
        neighbor_right = node - (n_lattice - 1)
    if (node - 1) % n_lattice < n_lattice - 1:
        neighbor_left = node - 1
    else:
        neighbor_left = node + (n_lattice - 1)
    if node - n_lattice >= 0:
        neighbor_up = node - n_lattice
    else:
        neighbor_up = node + n_lattice * (n_lattice - 1)
    if node + n_lattice < n_space:
        neighbor_down = node + n_lattice
    else:
        neighbor_down = node - n_lattice * (n_lattice - 1)
    return {"right": neighbor_right, "left": neighbor_left,
            "up": neighbor_up, "down": neighbor_down}


def create_matrix_F(n_space, n_lattice, d, v1, v2, dtype=jnp.float32):
    """F = I + M, with M built node-by-node (deterministic parameter values)."""
    D = d * d
    M = np.zeros((n_space, n_space), dtype=np.float64)
    np.fill_diagonal(M, -4.0 * D)
    directions = {"right": (1.0, 0.0), "left": (-1.0, 0.0),
                  "up": (0.0, 1.0), "down": (0.0, -1.0)}
    for node in range(n_space):
        nbrs = _get_neighbor_nodes(node, n_space, n_lattice)
        for name, nb in nbrs.items():
            dx, dy = directions[name]
            M[node, nb] = D - 0.5 * (dx * v1 + dy * v2)
    F = np.eye(n_space, dtype=np.float64) + M
    return jnp.asarray(F, dtype)


# ----------------------------------------------------------------------------
# Pallas kernel:  out[b, :, tile] = F @ x[b, :, tile]  (+ b_f)
#   F    : (n_space, n_space), resident in VMEM (constant index_map)
#   x/out: (n_space, tile_s) per grid step (batch dim Squeezed)
#   bias : (1,) f32 in SMEM, read as a scalar
# ----------------------------------------------------------------------------
def _make_kernel(with_bias):
    def kernel(*refs):
        if with_bias:
            b_ref, f_ref, x_ref, o_ref = refs
        else:
            f_ref, x_ref, o_ref = refs
        acc = jnp.dot(f_ref[...], x_ref[...], preferred_element_type=jnp.float32)
        if with_bias:
            acc = acc + b_ref[0]          # scalar from SMEM, broadcast on VPU
        o_ref[...] = acc.astype(o_ref.dtype)
    return kernel


def _round_up(x, m):
    return ((x + m - 1) // m) * m


def _pad_tile_bytes(rows, cols, itemsize):
    # Sub-32-bit dtypes pack along sublanes.
    sub = 8 * max(1, 4 // itemsize)
    return _round_up(rows, sub) * _round_up(cols, 128) * itemsize


def _vmem_capacity_bytes():
    try:
        info = pltpu.get_tpu_info()
        for attr in ("vmem_capacity_bytes", "vmem_size_bytes", "vmem_bytes"):
            v = getattr(info, attr, None)
            if v:
                return int(v)
    except Exception:
        pass
    return 64 << 20   # conservative fallback (v7x physical VMEM per TC)


def _auto_sample_tile(n_space, n_samples, itemsize, budget):
    """Biggest 128-multiple sample tile that fits the VMEM budget."""
    if n_samples <= 128:
        return n_samples                         # full (ragged) lane dim
    rows = _round_up(n_space, 8)
    f_bytes = 2 * _pad_tile_bytes(n_space, n_space, itemsize)   # resident F (worst case 2-buf)
    avail = max(budget - f_bytes, 2 << 20)
    # x tile + out tile, each double-buffered -> 4 buffers of (rows, tile)
    tile = (avail // (4 * rows * itemsize)) // 128 * 128
    tile = int(max(128, min(tile, 4096)))
    return min(tile, _round_up(n_samples, 128))


def temporal_layer_forward(x, F, b_f=None, transpose=False, with_bias=True,
                           sample_tile=None):
    """x: (B, n_space, n_samples); F: (n_space, n_space); b_f: scalar array."""
    B, n_space, n_samples = x.shape
    assert F.shape == (n_space, n_space)
    itemsize = jnp.dtype(x.dtype).itemsize

    # One-time O(n_space^2) transpose in the wrapper; avoids per-grid-step
    # relayout of F inside the kernel body.
    F_use = (F.T if transpose else F).astype(x.dtype)

    # ---- tile selection from the VMEM budget --------------------------------
    vmem_cap = _vmem_capacity_bytes()
    budget = int(0.75 * vmem_cap)            # ~48 MiB on v7x, ~96 MiB on v5e/v6e
    tile_s = sample_tile if sample_tile is not None else _auto_sample_tile(
        n_space, n_samples, itemsize, budget)
    if tile_s >= n_samples:
        tile_s = n_samples                    # full-dim block, everything in-bounds
    num_tiles = pl.cdiv(n_samples, tile_s)
    # Keep both v7x TensorCores busy: if the whole grid would be a single step,
    # split the sample axis in two (when there are enough lanes to matter).
    if B * num_tiles == 1 and n_samples >= 256:
        tile_s = _round_up(-(-n_samples // 2), 128)
        num_tiles = pl.cdiv(n_samples, tile_s)

    # ---- specs (no wrapper transposes, no explicit padding) -----------------
    f_spec = pl.BlockSpec((n_space, n_space), lambda b, j: (0, 0))     # resident F
    x_spec = pl.BlockSpec((pl.Squeezed(), n_space, tile_s), lambda b, j: (b, 0, j))
    o_spec = pl.BlockSpec((pl.Squeezed(), n_space, tile_s), lambda b, j: (b, 0, j))

    in_specs = [f_spec, x_spec]
    args = [F_use, x]
    if with_bias:
        b_arr = jnp.reshape(b_f, (1,)).astype(jnp.float32)
        in_specs = [pl.BlockSpec(memory_space=pltpu.MemorySpace.SMEM)] + in_specs
        args = [b_arr] + args

    # ---- VMEM limit: never below the need, never above the physical budget --
    vmem_need = (2 * _pad_tile_bytes(n_space, n_space, itemsize)
                 + 4 * _pad_tile_bytes(n_space, tile_s, itemsize))
    vmem_limit = int(min(max(2 * vmem_need, 8 << 20), budget))
    vmem_limit = int(max(vmem_limit, vmem_need + (2 << 20)))

    cost = pl.CostEstimate(
        flops=2 * n_space * n_space * B * n_samples,
        transcendentals=0,
        bytes_accessed=itemsize * (n_space * n_space + 2 * B * n_space * n_samples))

    out = pl.pallas_call(
        _make_kernel(with_bias),
        out_shape=jax.ShapeDtypeStruct((B, n_space, n_samples), x.dtype),
        grid_spec=pltpu.PrefetchScalarGridSpec(
            num_scalar_prefetch=0,
            grid=(B, num_tiles),
            in_specs=in_specs,
            out_specs=o_spec,
        ),
        compiler_params=pltpu.CompilerParams(
            dimension_semantics=("parallel", "parallel"),
            vmem_limit_bytes=vmem_limit),
        cost_estimate=cost,
    )(*args)
    return out


if __name__ == "__main__":
    # config (small, consistent with the module): n_lattice^2 = n_space
    n_lattice = 4
    n_space = n_lattice * n_lattice      # 16
    n_samples = 8
    batch = 2

    # deterministic parameters (exactly the module's __init__ values)
    d = float(np.sqrt(0.01))             # 0.1
    v1 = -0.3
    v2 = 0.3
    b_f = jnp.asarray(0.0, dtype=jnp.float32)

    F = create_matrix_F(n_space, n_lattice, d, v1, v2, dtype=jnp.float32)

    key = jax.random.PRNGKey(0)
    x = jax.random.normal(key, (batch, n_space, n_samples), dtype=jnp.float32)

    # forward, no transpose, with bias (b_f = 0.0 as in the module init)
    out = jax.block_until_ready(
        temporal_layer_forward(x, F, b_f, transpose=False, with_bias=True))
    ref = jnp.einsum("ij,bjk->bik", F, x) + b_f
    assert out.shape == (batch, n_space, n_samples)
    np.testing.assert_allclose(np.asarray(out), np.asarray(ref), rtol=1e-5, atol=1e-5)

    # nonzero bias, to exercise the SMEM bias path
    b_nz = jnp.asarray(0.5, dtype=jnp.float32)
    out_b = jax.block_until_ready(
        temporal_layer_forward(x, F, b_nz, transpose=False, with_bias=True))
    ref_b = jnp.einsum("ij,bjk->bik", F, x) + b_nz
    np.testing.assert_allclose(np.asarray(out_b), np.asarray(ref_b), rtol=1e-5, atol=1e-5)

    # transpose path (F.T applied once in the wrapper)
    out_t = jax.block_until_ready(
        temporal_layer_forward(x, F, b_f, transpose=True, with_bias=True))
    ref_t = jnp.einsum("ji,bjk->bik", F, x) + b_f
    np.testing.assert_allclose(np.asarray(out_t), np.asarray(ref_t), rtol=1e-5, atol=1e-5)

    # no-bias path (bias input not passed to the kernel at all)
    out_nb = jax.block_until_ready(
        temporal_layer_forward(x, F, None, transpose=False, with_bias=False))
    ref_nb = jnp.einsum("ij,bjk->bik", F, x)
    np.testing.assert_allclose(np.asarray(out_nb), np.asarray(ref_nb), rtol=1e-5, atol=1e-5)

    # larger ragged case: tiled sample axis with a masked last block (no jnp.pad)
    n_big = 200
    x_big = jax.random.normal(jax.random.PRNGKey(1), (batch, n_space, n_big),
                              dtype=jnp.float32)
    out_big = jax.block_until_ready(
        temporal_layer_forward(x_big, F, b_nz, transpose=False, with_bias=True,
                               sample_tile=128))
    ref_big = jnp.einsum("ij,bjk->bik", F, x_big) + b_nz
    np.testing.assert_allclose(np.asarray(out_big), np.asarray(ref_big),
                               rtol=1e-5, atol=1e-5)

    print("KERNEL_OK")
</pallas_src>

<mosaic_0001>
module attributes {stable_mosaic.version = 11 : i64} {
  func.func @kernel(%arg0: i32, %arg1: i32, %arg2: memref<1xf32, #tpu.memory_space<smem>>, %arg3: memref<16x16xf32, #tpu.memory_space<vmem>>, %arg4: memref<1x16x8xf32, #tpu.memory_space<vmem>>, %arg5: memref<1x16x8xf32, #tpu.memory_space<vmem>>) attributes {dimension_semantics = [#tpu.dimension_semantics<parallel>, #tpu.dimension_semantics<parallel>], iteration_bounds = array<i64: 2, 1>, scalar_prefetch = 0 : i64, scratch_operands = 0 : i64, tpu.core_type = #tpu.core_type<tc>, window_params = [{transform_indices = @transform_0, window_bounds = array<i64: 1>}, {pipeline_mode = #tpu.pipeline_mode<synchronous>, transform_indices = @transform_1, window_bounds = array<i64: 16, 16>}, {transform_indices = @transform_2, window_bounds = array<i64: 1, 16, 8>}, {transform_indices = @transform_3, window_bounds = array<i64: 1, 16, 8>}]} {
    %c0 = arith.constant 0 : index
    %c0_0 = arith.constant 0 : index
    %0 = vector.load %arg3[%c0, %c0_0] : memref<16x16xf32, #tpu.memory_space<vmem>>, vector<16x16xf32>
    %c0_1 = arith.constant 0 : index
    %c0_2 = arith.constant 0 : index
    %c0_3 = arith.constant 0 : index
    %1 = vector.load %arg4[%c0_1, %c0_2, %c0_3] : memref<1x16x8xf32, #tpu.memory_space<vmem>>, vector<1x16x8xf32>
    %2 = vector.shape_cast %1 : vector<1x16x8xf32> to vector<16x8xf32>
    %cst = arith.constant dense<0.000000e+00> : vector<16x8xf32>
    %3 = tpu.matmul %0, %2, %cst {dimension_numbers = #tpu.dot_dimension_numbers<[1], [0], [0], [1], [0, 0, 1, 1], [], []>} : vector<16x16xf32>, vector<16x8xf32>, vector<16x8xf32> -> vector<16x8xf32>
    %c0_4 = arith.constant 0 : index
    %4 = memref.load %arg2[%c0_4] : memref<1xf32, #tpu.memory_space<smem>>
    %5 = vector.broadcast %4 : f32 to vector<16x8xf32>
    %6 = arith.addf %3, %5 : vector<16x8xf32>
    %c0_5 = arith.constant 0 : index
    %c0_6 = arith.constant 0 : index
    %c0_7 = arith.constant 0 : index
    %7 = vector.load %arg5[%c0_5, %c0_6, %c0_7] : memref<1x16x8xf32, #tpu.memory_space<vmem>>, vector<1x16x8xf32>
    %8 = vector.shape_cast %7 : vector<1x16x8xf32> to vector<16x8xf32>
    %9 = vector.shape_cast %6 : vector<16x8xf32> to vector<1x16x8xf32>
    tpu.vector_store %arg5[%c0_5, %c0_6, %c0_7], %9 {strides = array<i32>} : memref<1x16x8xf32, #tpu.memory_space<vmem>>, vector<1x16x8xf32>,
    return
  }
  func.func @transform_0(%arg0: i32, %arg1: i32) -> i32 {
    %c0_i32 = arith.constant 0 : i32
    %c0_i32_0 = arith.constant 0 : i32
    return %c0_i32 : i32
  }
  func.func @transform_1(%arg0: i32, %arg1: i32) -> (i32, i32) {
    %c0_i32 = arith.constant 0 : i32
    %c0_i32_0 = arith.constant 0 : i32
    %c0_i32_1 = arith.constant 0 : i32
    return %c0_i32, %c0_i32_0 : i32, i32
  }
  func.func @transform_2(%arg0: i32, %arg1: i32) -> (i32, i32, i32) {
    %c0_i32 = arith.constant 0 : i32
    %c0_i32_0 = arith.constant 0 : i32
    return %arg0, %c0_i32, %arg1 : i32, i32, i32
  }
  func.func @transform_3(%arg0: i32, %arg1: i32) -> (i32, i32, i32) {
    %c0_i32 = arith.constant 0 : i32
    %c0_i32_0 = arith.constant 0 : i32
    return %arg0, %c0_i32, %arg1 : i32, i32, i32
  }
}

</mosaic_0001>

<bundles_post_ra>
// kernel: tpu_custom_call.1
= control target key start
LH: loop header
LB: loop body
LE: loop exit
PB: predicated region body
PF: predicated region fallthrough
CT: control target
= control target key end

     0   :  { %s413_s14 = smov 0   ;;  %s415_s15 = smov 0   ;;  %s452_s0 = inlined_call_operand.<no memory space> [shape: f32[1], index: 0, kind: input, shape index: {}]   ;;  %s453_s1 = inlined_call_operand.vmem [shape: f32[16,16], index: 1, kind: input, shape index: {}]   ;;  %s454_s2 = inlined_call_operand.vmem [shape: f32[2,16,8], index: 2, kind: input, shape index: {}]   ;;  %s455_s3 = inlined_call_operand.vmem [shape: f32[2,16,8], index: 3, kind: output, shape index: {}]  }
   0x1   :  { %8 = sst [smem:[#allocation2]] %s452_s0  ;;  %s417_s16 = smov 0  }
   0x2 LB: > { %s26_s0 = sadd.s32 1, %s384_s15  ;;  %p329_p0 = scmp.ge.s32.totalorder %s388_s16, 1  ;;  %s388_s16 = sphi %s417_s16, %s14_s16   ;;  %s384_s15 = sphi %s415_s15, %s457_s15   ;;  %s380_s14 = sphi %s413_s14, %s456_s14  }
   0x3   : > { %p28_p1 = scmp.ge.s32.totalorder %s26_s0, 2  ;;  %p157_p2 = scmp.lt.s32.totalorder %s388_s16, 3 }
   0x5   : > { %s459_s0 = smov (%p28_p1, %s26_s0), 0  ;;  %p158_p3 = pnand %p329_p0, %p157_p2 }
   0x6   : > { %p187_p4 = scmp.lt.s32.totalorder (!%p158_p3), %s380_s14, 1  ;;  %s207_s25 = sld [smem:[#allocation2]] (!%p158_p3) }
   0x7   : > { %161 = sbr.rel (%p158_p3) target bundleno = 149 (0x95), region = 32 }
   0xc   : > { %s461_s14 = smov (!%p187_p4, %s380_s14), 1  ;;  %v203_v2 = vld [vmem:[%s453_s1] sm:$0xff]  ;;  %vm209_vm0 = vcmask 130048   ;;  %v204_v3 = vld [vmem:[%s453_s1 + $0x8] sm:$0xff]  ;;  %v208_v4 = vstv %s207_s25  ;;  %vm239_vm1 = vcmask 64512  }
   0xd   : > { %s338_s17 = sshll.u32 %s461_s14, 4 }
   0xe   : > { %s194_s20 = scalar_lea.vmem %s454_s2, %s338_s17  ;;  %s202_s28 = scalar_lea.vmem %s455_s3, %s338_s17 }
   0xf   : > { %v206_v0 = vld [vmem:[%s194_s20 + $0x8] sm:$0xff]  ;;  %v205_v1 = vld [vmem:[%s194_s20] sm:$0xff] }
  0x10   : > { %230 = vmatpush.msra.mxu0 %v206_v0  ;;  %340 = vmatpush.msra.mxu1 %v206_v0 }
  0x12   : > { %231 = vmatpush.msra.mxu0 %v205_v1  ;;  %341 = vmatpush.msra.mxu1 %v205_v1 }
  0x13   : > { %334 = vmatmul.msk.f32.vlgmr.msra.gmra.mxu0 %vm209_vm0, %v203_v2  ;;  %335 = vmatmul.msk.f32.vlgmr.msra.gmra.mxu1 %vm209_vm0, %v204_v3 }
  0x90   : > { %v233_v5 = vpop.f32.mrf.mxu0  ;;  %v236_v6 = vpop.f32.mrf.mxu1 }
  0x91   : > { %v234_v7 = vadd.f32 %v233_v5, %v208_v4  ;;  %v237_v8 = vadd.f32 %v236_v6, %v208_v4 }
  0x93   : > { %240 = vst.msk [vmem:[%s202_s28] sm:$0xff] %vm239_vm1, %v234_v7 }
  0x94   : > { %241 = vst.msk [vmem:[%s202_s28 + $0x8] sm:$0xff] %vm239_vm1, %v237_v8 }
  0x95 PF: > { %s14_s16 = sadd.s32 1, %s388_s16   ;;  %s456_s14 = smov %s384_s15 }
  0x96   : > { %p11_p5 = scmp.ge.s32.totalorder %s14_s16, 4   ;;  %s457_s15 = smov %s459_s0 }
  0x98   :  { %13 = sbr.rel (!%p11_p5) target bundleno = 2 (0x2), region = 62 }

</bundles_post_ra>
